<compile_context>
chip_gen: v7x
topology: tpu7x:2x2x1
jax: 0.10.0
libtpu: 0.0.40
codegen_flags: <defaults>
</compile_context>

<pallas_src>
import jax
import jax.numpy as jnp
from jax.experimental import pallas as pl
from jax.experimental.pallas import tpu as pltpu


def _round_up(x, m):
    return ((x + m - 1) // m) * m


def modelcsv_kernel(img_ref, pfeat_ref, wbig_ref, w2_ref, b_ref, out_ref):
    # img_ref:   (TB, C*HW)      flattened image rows (pooling folded into wbig)
    # pfeat_ref: (TB, P_pad)     zero-padded CSV features
    # wbig_ref:  (C*HW, CLS_pad) fused pool+backbone+classifier weight
    # w2_ref:    (P_pad, CLS_pad) classifier weight for the pfeat half of cat()
    # b_ref:     (1, CLS_pad)    fused bias
    logits = jnp.dot(img_ref[...], wbig_ref[...],
                     preferred_element_type=jnp.float32)
    logits += jnp.dot(pfeat_ref[...], w2_ref[...],
                      preferred_element_type=jnp.float32)
    out_ref[...] = (logits + b_ref[...]).astype(out_ref.dtype)


def modelcsv_forward(img, pfeat, wb, bb, wc, bc):
    """img: (B, C, H, W) NCHW; pfeat: (B, P);
    wb: (100, C), bb: (100,)   -- backbone stand-in linear (torch layout)
    wc: (cls, 100+P), bc: (cls,) -- classifier (torch Linear layout)."""
    B, C, H, W = img.shape
    HW = H * W
    K = C * HW
    P = pfeat.shape[1]
    F = wb.shape[0]           # 100 backbone features
    CLS = wc.shape[0]

    CLS_pad = _round_up(CLS, 128)
    P_pad = _round_up(P, 128)

    # ---- fold the linear chain at trace time (backbone stand-in is linear) ----
    w1_t = wc[:, :F].T                                  # (F, CLS)
    w_fused = wb.T @ w1_t                               # (C, CLS)
    b_fused = bb @ w1_t + bc                            # (CLS,)

    # Fold the spatial mean into the matmul reduce dim:
    #   mean_pool(img) @ w_fused == img.reshape(B, C*HW) @ repeat(w_fused / HW)
    w_big = jnp.broadcast_to(w_fused[:, None, :] / HW, (C, HW, CLS)).reshape(K, CLS)
    w_big = jnp.pad(w_big, ((0, 0), (0, CLS_pad - CLS)))              # (K, CLS_pad)

    w2_t = wc[:, F:].T                                                # (P, CLS)
    w2_t = jnp.pad(w2_t, ((0, P_pad - P), (0, CLS_pad - CLS)))        # (P_pad, CLS_pad)
    b2 = jnp.pad(b_fused, (0, CLS_pad - CLS)).reshape(1, CLS_pad)     # (1, CLS_pad)

    # ---- batch tiling: multiple of 8 (f32 sublane), bounded for VMEM (v7x) ----
    bytes_per_img_row = K * 4
    tb_cap = max(8, ((8 * 1024 * 1024) // bytes_per_img_row) // 8 * 8)  # ~8 MiB/buffer
    TB = int(min(512, tb_cap, _round_up(B, 8)))
    B_pad = _round_up(B, TB)

    img_flat = jnp.pad(img.reshape(B, K).astype(jnp.float32),
                       ((0, B_pad - B), (0, 0)))
    pfeat_pad = jnp.pad(pfeat.astype(jnp.float32),
                        ((0, B_pad - B), (0, P_pad - P)))

    out = pl.pallas_call(
        modelcsv_kernel,
        out_shape=jax.ShapeDtypeStruct((B_pad, CLS_pad), jnp.float32),
        grid=(B_pad // TB,),
        in_specs=[
            pl.BlockSpec((TB, K), lambda i: (i, 0)),           # img tile (pipelined)
            pl.BlockSpec((TB, P_pad), lambda i: (i, 0)),       # pfeat tile
            pl.BlockSpec((K, CLS_pad), lambda i: (0, 0)),      # weights stay resident
            pl.BlockSpec((P_pad, CLS_pad), lambda i: (0, 0)),
            pl.BlockSpec((1, CLS_pad), lambda i: (0, 0)),
        ],
        out_specs=pl.BlockSpec((TB, CLS_pad), lambda i: (i, 0)),
        compiler_params=pltpu.CompilerParams(
            dimension_semantics=("parallel",)),
    )(img_flat, pfeat_pad, w_big, w2_t, b2)

    return out[:B, :CLS]


if __name__ == "__main__":
    # Small shapes consistent with the forward pass.
    B, C, H, W = 2, 4, 16, 16     # image batch (NCHW)
    PEN = 12                      # pen_features
    CLS = 10                      # number of classes
    FEAT = 100                    # backbone output features (fixed by module)

    key = jax.random.PRNGKey(0)
    k_img, k_pf, k_wb, k_bb, k_wc, k_bc = jax.random.split(key, 6)

    img = jax.random.normal(k_img, (B, C, H, W), dtype=jnp.float32)
    pfeat = jax.random.normal(k_pf, (B, PEN), dtype=jnp.float32)

    # deterministic parameters (torch nn.Linear layout: weight (out, in), bias (out,))
    wb = jax.random.normal(k_wb, (FEAT, C), dtype=jnp.float32) * 0.05
    bb = jax.random.normal(k_bb, (FEAT,), dtype=jnp.float32) * 0.05
    wc = jax.random.normal(k_wc, (CLS, FEAT + PEN), dtype=jnp.float32) * 0.05
    bc = jax.random.normal(k_bc, (CLS,), dtype=jnp.float32) * 0.05

    out = modelcsv_forward(img, pfeat, wb, bb, wc, bc)
    out = jax.block_until_ready(out)

    # reference in plain JAX (same math as the PyTorch module with the stand-in backbone)
    pooled = img.reshape(B, C, H * W).mean(axis=-1)
    feat = pooled @ wb.T + bb
    ref = jnp.concatenate([feat, pfeat], axis=1) @ wc.T + bc
    assert out.shape == (B, CLS)
    assert jnp.allclose(out, ref, atol=1e-4, rtol=1e-4)

    print("KERNEL_OK")
</pallas_src>

<mosaic_0001>
module attributes {stable_mosaic.version = 11 : i64} {
  func.func @modelcsv_kernel(%arg0: i32, %arg1: memref<8x1024xf32, #tpu.memory_space<vmem>>, %arg2: memref<8x128xf32, #tpu.memory_space<vmem>>, %arg3: memref<1024x128xf32, #tpu.memory_space<vmem>>, %arg4: memref<128x128xf32, #tpu.memory_space<vmem>>, %arg5: memref<1x128xf32, #tpu.memory_space<vmem>>, %arg6: memref<8x128xf32, #tpu.memory_space<vmem>>) attributes {dimension_semantics = [#tpu.dimension_semantics<parallel>], iteration_bounds = array<i64: 1>, scalar_prefetch = 0 : i64, scratch_operands = 0 : i64, tpu.core_type = #tpu.core_type<tc>, window_params = [{transform_indices = @transform_0, window_bounds = array<i64: 8, 1024>}, {transform_indices = @transform_1, window_bounds = array<i64: 8, 128>}, {pipeline_mode = #tpu.pipeline_mode<synchronous>, transform_indices = @transform_2, window_bounds = array<i64: 1024, 128>}, {pipeline_mode = #tpu.pipeline_mode<synchronous>, transform_indices = @transform_3, window_bounds = array<i64: 128, 128>}, {pipeline_mode = #tpu.pipeline_mode<synchronous>, transform_indices = @transform_4, window_bounds = array<i64: 1, 128>}, {transform_indices = @transform_5, window_bounds = array<i64: 8, 128>}]} {
    %c0 = arith.constant 0 : index
    %c0_0 = arith.constant 0 : index
    %0 = vector.load %arg1[%c0, %c0_0] : memref<8x1024xf32, #tpu.memory_space<vmem>>, vector<8x1024xf32>
    %c0_1 = arith.constant 0 : index
    %c0_2 = arith.constant 0 : index
    %1 = vector.load %arg3[%c0_1, %c0_2] : memref<1024x128xf32, #tpu.memory_space<vmem>>, vector<1024x128xf32>
    %cst = arith.constant dense<0.000000e+00> : vector<8x128xf32>
    %2 = tpu.matmul %0, %1, %cst {dimension_numbers = #tpu.dot_dimension_numbers<[1], [0], [0], [1], [0, 0, 1, 1], [], []>} : vector<8x1024xf32>, vector<1024x128xf32>, vector<8x128xf32> -> vector<8x128xf32>
    %c0_3 = arith.constant 0 : index
    %c0_4 = arith.constant 0 : index
    %3 = vector.load %arg2[%c0_3, %c0_4] : memref<8x128xf32, #tpu.memory_space<vmem>>, vector<8x128xf32>
    %c0_5 = arith.constant 0 : index
    %c0_6 = arith.constant 0 : index
    %4 = vector.load %arg4[%c0_5, %c0_6] : memref<128x128xf32, #tpu.memory_space<vmem>>, vector<128x128xf32>
    %cst_7 = arith.constant dense<0.000000e+00> : vector<8x128xf32>
    %5 = tpu.matmul %3, %4, %cst_7 {dimension_numbers = #tpu.dot_dimension_numbers<[1], [0], [0], [1], [0, 0, 1, 1], [], []>} : vector<8x128xf32>, vector<128x128xf32>, vector<8x128xf32> -> vector<8x128xf32>
    %6 = arith.addf %2, %5 : vector<8x128xf32>
    %c0_8 = arith.constant 0 : index
    %c0_9 = arith.constant 0 : index
    %7 = vector.load %arg5[%c0_8, %c0_9] : memref<1x128xf32, #tpu.memory_space<vmem>>, vector<1x128xf32>
    %8 = vector.broadcast %7 : vector<1x128xf32> to vector<8x128xf32>
    %9 = arith.addf %6, %8 : vector<8x128xf32>
    %c0_10 = arith.constant 0 : index
    %c0_11 = arith.constant 0 : index
    %10 = vector.load %arg6[%c0_10, %c0_11] : memref<8x128xf32, #tpu.memory_space<vmem>>, vector<8x128xf32>
    tpu.vector_store %arg6[%c0_10, %c0_11], %9 {strides = array<i32>} : memref<8x128xf32, #tpu.memory_space<vmem>>, vector<8x128xf32>,
    return
  }
  func.func @transform_0(%arg0: i32) -> (i32, i32) {
    %c0_i32 = arith.constant 0 : i32
    %c0_i32_0 = arith.constant 0 : i32
    return %arg0, %c0_i32 : i32, i32
  }
  func.func @transform_1(%arg0: i32) -> (i32, i32) {
    %c0_i32 = arith.constant 0 : i32
    %c0_i32_0 = arith.constant 0 : i32
    return %arg0, %c0_i32 : i32, i32
  }
  func.func @transform_2(%arg0: i32) -> (i32, i32) {
    %c0_i32 = arith.constant 0 : i32
    %c0_i32_0 = arith.constant 0 : i32
    %c0_i32_1 = arith.constant 0 : i32
    return %c0_i32, %c0_i32_0 : i32, i32
  }
  func.func @transform_3(%arg0: i32) -> (i32, i32) {
    %c0_i32 = arith.constant 0 : i32
    %c0_i32_0 = arith.constant 0 : i32
    %c0_i32_1 = arith.constant 0 : i32
    return %c0_i32, %c0_i32_0 : i32, i32
  }
  func.func @transform_4(%arg0: i32) -> (i32, i32) {
    %c0_i32 = arith.constant 0 : i32
    %c0_i32_0 = arith.constant 0 : i32
    %c0_i32_1 = arith.constant 0 : i32
    return %c0_i32, %c0_i32_0 : i32, i32
  }
  func.func @transform_5(%arg0: i32) -> (i32, i32) {
    %c0_i32 = arith.constant 0 : i32
    %c0_i32_0 = arith.constant 0 : i32
    return %arg0, %c0_i32 : i32, i32
  }
}

</mosaic_0001>

<bundles_post_ra>
// kernel: tpu_custom_call.1
= control target key start
LH: loop header
LB: loop body
LE: loop exit
PB: predicated region body
PF: predicated region fallthrough
CT: control target
= control target key end

     0   :  { %10 = vsyncpa [#allocation3], 0  ;;  %s1185_s0 = inlined_call_operand.hbm [shape: f32[8,1024], index: 0, kind: input, shape index: {}]   ;;  %s1186_s1 = inlined_call_operand.hbm [shape: f32[8,128], index: 1, kind: input, shape index: {}]   ;;  %s1187_s2 = inlined_call_operand.hbm [shape: f32[1024,128], index: 2, kind: input, shape index: {}]   ;;  %s1188_s3 = inlined_call_operand.hbm [shape: f32[128,128], index: 3, kind: input, shape index: {}]   ;;  %s1189_s4 = inlined_call_operand.vmem [shape: f32[1,128], index: 4, kind: input, shape index: {}]   ;;  %s1190_s5 = inlined_call_operand.hbm [shape: f32[8,128], index: 5, kind: output, shape index: {}]  }
   0x1   :  { %11 = vsyncpa [#allocation6], 0 }
   0x2   :  { %12 = vsyncpa [#allocation9], 0 }
   0x3   :  { %13 = vsyncpa [#allocation4], 0  ;;  %s1074_s18 = smov [#allocation5]   ;;  %s1075_s20 = smov [#allocation2]  }
   0x4   :  { %s30_s19 = sshll.u32 %s1074_s18, 4  ;;  %s20_s21 = sshll.u32 %s1075_s20, 4  ;;  %s31_s19 = int_to_ptr.vmem [resolvable:$true] %s30_s19  ;;  %s21_s21 = int_to_ptr.vmem [resolvable:$true] %s20_s21 }
   0x5   :  { %s956_s24 = scalar_lea.hbm %s1186_s1, 128 }
   0x6   :  { %p957_p0 = scmp.ne.s32.totalorder %s1186_s1, %s956_s24  ;;  %p960_p1 = scmp.lt.u32.totalorder %s956_s24, %s1186_s1 }
   0x8   :  { %p962_p2 = pnand %p960_p1, %p957_p0 }
   0xa   :  { %965 = shalt.err (!%p962_p2)
}
   0xb   :  { %s966_s29 = scalar_lea.vmem %s31_s19, 128  ;;  %p971_p4 = scmp.lt.s32.totalorder %s31_s19, %s31_s19 }
   0xc   :  { %p967_p3 = scmp.ne.s32.totalorder %s31_s19, %s966_s29  ;;  %p972_p5 = scmp.lt.s32.totalorder %s966_s29, %s966_s29 }
   0xe   :  { %p973_p6 = por %p972_p5, %p971_p4 }
  0x10   :  { %p974_p7 = pnand %p973_p6, %p967_p3 }
  0x12   :  { %977 = shalt.err (!%p974_p7)
}
  0x13   :  { %33 = dma.hbm_to_vmem [thread:$0]  %s1186_s1, 128, %s31_s19, [#allocation6]  }
  0x14   :  { %s978_s9 = scalar_lea.hbm %s1185_s0, 1024 }
  0x15   :  { %p979_p8 = scmp.ne.s32.totalorder %s1185_s0, %s978_s9  ;;  %p982_p9 = scmp.lt.u32.totalorder %s978_s9, %s1185_s0 }
  0x17   :  { %p984_p10 = pnand %p982_p9, %p979_p8 }
  0x19   :  { %987 = shalt.err (!%p984_p10)
}
  0x1a   :  { %s988_s14 = scalar_lea.vmem %s21_s21, 1024  ;;  %p993_p12 = scmp.lt.s32.totalorder %s21_s21, %s21_s21 }
  0x1b   :  { %p989_p11 = scmp.ne.s32.totalorder %s21_s21, %s988_s14  ;;  %p994_p13 = scmp.lt.s32.totalorder %s988_s14, %s988_s14 }
  0x1d   :  { %p995_p0 = por %p994_p13, %p993_p12 }
  0x1f   :  { %p996_p1 = pnand %p995_p0, %p989_p11 }
  0x21   :  { %999 = shalt.err (!%p996_p1)
}
  0x22   :  { %23 = dma.hbm_to_vmem [thread:$0]  %s1185_s0, 1024, %s21_s21, [#allocation3]  }
  0x23   :  { %s1076_s16 = smov [#allocation7]   ;;  %s1000_s20 = scalar_lea.hbm %s1187_s2, 16384 }
  0x24   :  { %s39_s17 = sshll.u32 %s1076_s16, 4  ;;  %p1001_p2 = scmp.ne.s32.totalorder %s1187_s2, %s1000_s20  ;;  %s40_s17 = int_to_ptr.vmem [resolvable:$true] %s39_s17 }
  0x25   :  { %p1004_p3 = scmp.lt.u32.totalorder %s1000_s20, %s1187_s2 }
  0x27   :  { %p1006_p4 = pnand %p1004_p3, %p1001_p2 }
  0x29   :  { %1009 = shalt.err (!%p1006_p4)
}
  0x2a   :  { %s1010_s26 = scalar_lea.vmem %s40_s17, 16384  ;;  %p1015_p6 = scmp.lt.s32.totalorder %s40_s17, %s40_s17 }
  0x2b   :  { %p1011_p5 = scmp.ne.s32.totalorder %s40_s17, %s1010_s26  ;;  %p1016_p7 = scmp.lt.s32.totalorder %s1010_s26, %s1010_s26 }
  0x2d   :  { %p1017_p8 = por %p1016_p7, %p1015_p6 }
  0x2f   :  { %p1018_p9 = pnand %p1017_p8, %p1011_p5 }
  0x31   :  { %1021 = shalt.err (!%p1018_p9)
}
  0x32   :  { %s1077_s0 = smov 128   ;;  %s1078_s21 = smov 8  }
  0x33   :  { %45 = dma.hbm_to_vmem [thread:$0]  %s1187_s2, 16384, %s40_s17, [#allocation6], %s1077_s0, %s1077_s0, %s1078_s21  }
  0x34   :  { %s1079_s29 = smov [#allocation8]   ;;  %s1022_s8 = scalar_lea.hbm %s1188_s3, 2048 }
  0x35   :  { %s51_s30 = sshll.u32 %s1079_s29, 4  ;;  %p1023_p10 = scmp.ne.s32.totalorder %s1188_s3, %s1022_s8  ;;  %s52_s30 = int_to_ptr.vmem [resolvable:$true] %s51_s30 }
  0x36   :  { %p1026_p11 = scmp.lt.u32.totalorder %s1022_s8, %s1188_s3 }
  0x38   :  { %p1028_p12 = pnand %p1026_p11, %p1023_p10 }
  0x3a   :  { %1031 = shalt.err (!%p1028_p12)
}
  0x3b   :  { %s1032_s13 = scalar_lea.vmem %s52_s30, 2048  ;;  %p1037_p0 = scmp.lt.s32.totalorder %s52_s30, %s52_s30 }
  0x3c   :  { %p1033_p13 = scmp.ne.s32.totalorder %s52_s30, %s1032_s13  ;;  %p1038_p1 = scmp.lt.s32.totalorder %s1032_s13, %s1032_s13 }
  0x3e   :  { %p1039_p2 = por %p1038_p1, %p1037_p0 }
  0x40   :  { %p1040_p3 = pnand %p1039_p2, %p1033_p13 }
  0x42   :  { %1043 = shalt.err (!%p1040_p3)
}
  0x43   :  { %57 = dma.hbm_to_vmem [thread:$0]  %s1188_s3, 2048, %s52_s30, [#allocation9], %s1077_s0, %s1077_s0, %s1078_s21  }
  0x44   :  { %1066 = dma.done.wait [#allocation3], 1024  }
  0x45   :  { %1067 = vsyncadd [#allocation3], 4294966272 }
  0x46   :  { %1068 = dma.done.wait [#allocation6], 16512  }
  0x47   :  { %1069 = vsyncadd [#allocation6], 4294950784 }
  0x48   :  { %1070 = dma.done.wait [#allocation9], 2048  }
  0x49   :  { %1071 = vsyncadd [#allocation9], 4294965248  ;;  %v1080_v0 = vmov 0.0|0.0   ;;  %vm1081_vm0 = vmmov 0   ;;  %v1082_v1 = vmov 0.0   ;;  %v209_v2 = vld [vmem:[#allocation8] sm:$0xff] }
  0x4a   :  { %794 = vmatprep.subr.bf16.mxu0 %v1080_v0  ;;  %791 = vmatprep.mubr.msk.f32.mxu0 %vm1081_vm0, %v1082_v1  ;;  %v210_v3 = vld [vmem:[#allocation8 + $0x8] sm:$0xff]  ;;  %v96_v4 = vld [vmem:[#allocation7 + $0x80] sm:$0xff]  ;;  %v211_v11 = vld [vmem:[#allocation8 + $0x10] sm:$0xff]  ;;  %s1083_s15 = smov [#allocation10]  }
  0x4b   :  { %v795_v5 = vpack.c.bf16 %v210_v3, %v209_v2  ;;  %v97_v6 = vld [vmem:[#allocation7 + $0x88] sm:$0xff]  ;;  %v80_v7 = vld [vmem:[#allocation7] sm:$0xff]  ;;  %v212_v12 = vld [vmem:[#allocation8 + $0x18] sm:$0xff]  ;;  %s590_s16 = sshll.u32 %s1083_s15, 4  ;;  %s591_s16 = int_to_ptr.vmem [resolvable:$true] %s590_s16 }
  0x4c   :  { %v81_v8 = vld [vmem:[#allocation7 + $0x8] sm:$0xff]  ;;  %v818_v9 = vpack.c.bf16 %v97_v6, %v96_v4  ;;  %v98_v13 = vld [vmem:[#allocation7 + $0x90] sm:$0xff]  ;;  %v798_v14 = vpack.c.bf16 %v212_v12, %v211_v11  ;;  %v99_v15 = vld [vmem:[#allocation7 + $0x98] sm:$0xff]  ;;  %s1044_s17 = scalar_lea.vmem %s591_s16, 128  ;;  %p1049_p5 = scmp.lt.s32.totalorder %s591_s16, %s591_s16 }
  0x4d   :  { %v820_v10 = vpack.c.bf16 %v81_v8, %v80_v7  ;;  %796 = vmatpush3.bf16.msra.mxu0 %v795_v5  ;;  %v82_v16 = vld [vmem:[#allocation7 + $0x10] sm:$0xff]  ;;  %v83_v17 = vld [vmem:[#allocation7 + $0x18] sm:$0xff]  ;;  %v822_v18 = vpack.c.bf16 %v99_v15, %v98_v13  ;;  %v213_v19 = vld [vmem:[#allocation8 + $0x20] sm:$0xff]  ;;  %p1045_p4 = scmp.ne.s32.totalorder %s591_s16, %s1044_s17  ;;  %p1050_p6 = scmp.lt.s32.totalorder %s1044_s17, %s1044_s17 }
  0x4e   :  { %819 = vmatprep.subr.bf16.mxu1 %v818_v9  ;;  %797 = vmatprep.subr.bf16.mxu0 %v1080_v0  ;;  %v214_v20 = vld [vmem:[#allocation8 + $0x28] sm:$0xff]  ;;  %v100_v21 = vld [vmem:[#allocation7 + $0xa0] sm:$0xff]  ;;  %v824_v22 = vpack.c.bf16 %v83_v17, %v82_v16  ;;  %v102_v28 = vld [vmem:[#allocation7 + $0xb0] sm:$0xff] }
  0x4f   :  { %821 = vmatpush3.bf16.msra.mxu1 %v820_v10  ;;  %v101_v23 = vld [vmem:[#allocation7 + $0xa8] sm:$0xff]  ;;  %v84_v25 = vld [vmem:[#allocation7 + $0x20] sm:$0xff]  ;;  %v801_v27 = vpack.c.bf16 %v214_v20, %v213_v19  ;;  %v103_v29 = vld [vmem:[#allocation7 + $0xb8] sm:$0xff]  ;;  %p1051_p7 = por %p1050_p6, %p1049_p5 }
  0x50   :  { %823 = vmatprep.subr.bf16.mxu1 %v822_v18  ;;  %v826_v24 = vpack.c.bf16 %v101_v23, %v100_v21  ;;  %v85_v26 = vld [vmem:[#allocation7 + $0x28] sm:$0xff]  ;;  %v215_v30 = vld [vmem:[#allocation8 + $0x30] sm:$0xff]  ;;  %v216_v31 = vld [vmem:[#allocation8 + $0x38] sm:$0xff]  ;;  %v830_v33 = vpack.c.bf16 %v103_v29, %v102_v28 }
  0x51   :  { %799 = vmatpush3.bf16.msra.mxu0 %v798_v14  ;;  %v828_v32 = vpack.c.bf16 %v85_v26, %v84_v25  ;;  %v86_v34 = vld [vmem:[#allocation7 + $0x30] sm:$0xff]  ;;  %v87_v35 = vld [vmem:[#allocation7 + $0x38] sm:$0xff]  ;;  %v804_v36 = vpack.c.bf16 %v216_v31, %v215_v30  ;;  %v104_v37 = vld [vmem:[#allocation7 + $0xc0] sm:$0xff]  ;;  %p1052_p8 = pnand %p1051_p7, %p1045_p4 }
  0x52   :  { %800 = vmatprep.subr.bf16.mxu0 %v1080_v0  ;;  %v105_v38 = vld [vmem:[#allocation7 + $0xc8] sm:$0xff]  ;;  %v217_v39 = vld [vmem:[#allocation8 + $0x40] sm:$0xff]  ;;  %v832_v41 = vpack.c.bf16 %v87_v35, %v86_v34  ;;  %v106_v46 = vld [vmem:[#allocation7 + $0xd0] sm:$0xff] }
  0x53   :  { %825 = vmatpush3.bf16.msra.mxu1 %v824_v22  ;;  %v218_v40 = vld [vmem:[#allocation8 + $0x48] sm:$0xff]  ;;  %v834_v42 = vpack.c.bf16 %v105_v38, %v104_v37  ;;  %v88_v43 = vld [vmem:[#allocation7 + $0x40] sm:$0xff]  ;;  %v107_v47 = vld [vmem:[#allocation7 + $0xd8] sm:$0xff] }
  0x54   :  { %827 = vmatprep.subr.bf16.mxu1 %v826_v24  ;;  %v89_v44 = vld [vmem:[#allocation7 + $0x48] sm:$0xff]  ;;  %v807_v45 = vpack.c.bf16 %v218_v40, %v217_v39  ;;  %v219_v48 = vld [vmem:[#allocation8 + $0x50] sm:$0xff]  ;;  %v220_v49 = vld [vmem:[#allocation8 + $0x58] sm:$0xff]  ;;  %v838_v52 = vpack.c.bf16 %v107_v47, %v106_v46 }
  0x55   :  { %802 = vmatpush3.bf16.msra.mxu0 %v801_v27  ;;  %v73_v50 = vld [vmem:[#allocation2 + $0x8] sm:$0xff]  ;;  %v836_v51 = vpack.c.bf16 %v89_v44, %v88_v43  ;;  %v90_v53 = vld [vmem:[#allocation7 + $0x50] sm:$0xff]  ;;  %v91_v54 = vld [vmem:[#allocation7 + $0x58] sm:$0xff]  ;;  %v810_v55 = vpack.c.bf16 %v220_v49, %v219_v48 }
  0x56   :  { %803 = vmatprep.subr.bf16.mxu0 %v1080_v0  ;;  %359 = vmatprep.mubr.f32.mxu1 %v73_v50  ;;  %v108_v56 = vld [vmem:[#allocation7 + $0xe0] sm:$0xff]  ;;  %v109_v57 = vld [vmem:[#allocation7 + $0xe8] sm:$0xff]  ;;  %v840_v60 = vpack.c.bf16 %v91_v54, %v90_v53  ;;  %v110_v2 = vld [vmem:[#allocation7 + $0xf0] sm:$0xff] }
  0x57   :  { %829 = vmatpush3.bf16.msra.mxu1 %v828_v32  ;;  %v221_v58 = vld [vmem:[#allocation8 + $0x60] sm:$0xff]  ;;  %v222_v59 = vld [vmem:[#allocation8 + $0x68] sm:$0xff]  ;;  %v842_v61 = vpack.c.bf16 %v109_v57, %v108_v56  ;;  %v111_v3 = vld [vmem:[#allocation7 + $0xf8] sm:$0xff] }
  0x58   :  { %831 = vmatprep.subr.bf16.mxu1 %v830_v33  ;;  %v92_v62 = vld [vmem:[#allocation7 + $0x60] sm:$0xff]  ;;  %v93_v63 = vld [vmem:[#allocation7 + $0x68] sm:$0xff]  ;;  %v813_v1 = vpack.c.bf16 %v222_v59, %v221_v58  ;;  %v223_v4 = vld [vmem:[#allocation8 + $0x70] sm:$0xff]  ;;  %v846_v9 = vpack.c.bf16 %v111_v3, %v110_v2 }
  0x59   :  { %805 = vmatpush3.bf16.msra.mxu0 %v804_v36  ;;  %v224_v5 = vld [vmem:[#allocation8 + $0x78] sm:$0xff]  ;;  %v844_v6 = vpack.c.bf16 %v93_v63, %v92_v62  ;;  %v128_v7 = vld [vmem:[#allocation7 + $0x180] sm:$0xff]  ;;  %v129_v8 = vld [vmem:[#allocation7 + $0x188] sm:$0xff] }
  0x5a   :  { %806 = vmatprep.subr.bf16.mxu0 %v1080_v0  ;;  %v94_v10 = vld [vmem:[#allocation7 + $0x70] sm:$0xff]  ;;  %v95_v11 = vld [vmem:[#allocation7 + $0x78] sm:$0xff]  ;;  %v816_v12 = vpack.c.bf16 %v224_v5, %v223_v4  ;;  %v160_v13 = vld [vmem:[#allocation7 + $0x280] sm:$0xff]  ;;  %v850_v15 = vpack.c.bf16 %v129_v8, %v128_v7 }
  0x5b   :  { %833 = vmatpush3.bf16.msra.mxu1 %v832_v41  ;;  %v161_v14 = vld [vmem:[#allocation7 + $0x288] sm:$0xff]  ;;  %v112_v16 = vld [vmem:[#allocation7 + $0x100] sm:$0xff]  ;;  %v848_v18 = vpack.c.bf16 %v95_v11, %v94_v10  ;;  %v130_v19 = vld [vmem:[#allocation7 + $0x190] sm:$0xff] }
  0x5c   :  { %835 = vmatprep.subr.bf16.mxu1 %v834_v42  ;;  %v113_v17 = vld [vmem:[#allocation7 + $0x108] sm:$0xff]  ;;  %v131_v20 = vld [vmem:[#allocation7 + $0x198] sm:$0xff]  ;;  %v882_v21 = vpack.c.bf16 %v161_v14, %v160_v13  ;;  %v144_v22 = vld [vmem:[#allocation7 + $0x200] sm:$0xff] }
  0x5d   :  { %808 = vmatpush3.bf16.msra.mxu0 %v807_v45  ;;  %v145_v23 = vld [vmem:[#allocation7 + $0x208] sm:$0xff]  ;;  %v208_v24 = vld [vmem:[#allocation5] sm:$0xff]  ;;  %v852_v25 = vpack.c.bf16 %v113_v17, %v112_v16  ;;  %v162_v26 = vld [vmem:[#allocation7 + $0x290] sm:$0xff]  ;;  %v854_v28 = vpack.c.bf16 %v131_v20, %v130_v19 }
  0x5e   :  { %809 = vmatprep.subr.bf16.mxu0 %v1080_v0  ;;  %v163_v27 = vld [vmem:[#allocation7 + $0x298] sm:$0xff]  ;;  %v114_v29 = vld [vmem:[#allocation7 + $0x110] sm:$0xff]  ;;  %v884_v31 = vpack.c.bf16 %v145_v23, %v144_v22  ;;  %v132_v32 = vld [vmem:[#allocation7 + $0x1a0] sm:$0xff] }
  0x5f   :  { %837 = vmatpush3.bf16.msra.mxu1 %v836_v51  ;;  %v72_v30 = vld [vmem:[#allocation2] sm:$0xff]  ;;  %v133_v33 = vld [vmem:[#allocation7 + $0x1a8] sm:$0xff]  ;;  %v886_v34 = vpack.c.bf16 %v163_v27, %v162_v26  ;;  %v146_v35 = vld [vmem:[#allocation7 + $0x210] sm:$0xff] }
  0x60   :  { %839 = vmatprep.subr.bf16.mxu1 %v838_v52  ;;  %v147_v36 = vld [vmem:[#allocation7 + $0x218] sm:$0xff]  ;;  %v164_v38 = vld [vmem:[#allocation7 + $0x2a0] sm:$0xff]  ;;  %v165_v39 = vld [vmem:[#allocation7 + $0x2a8] sm:$0xff]  ;;  %v858_v40 = vpack.c.bf16 %v133_v33, %v132_v32 }
  0x61   :  { %811 = vmatpush3.bf16.msra.mxu0 %v810_v55  ;;  %v116_v41 = vld [vmem:[#allocation7 + $0x120] sm:$0xff]  ;;  %v117_v42 = vld [vmem:[#allocation7 + $0x128] sm:$0xff]  ;;  %v888_v43 = vpack.c.bf16 %v147_v36, %v146_v35  ;;  %v134_v44 = vld [vmem:[#allocation7 + $0x1b0] sm:$0xff]  ;;  %v890_v47 = vpack.c.bf16 %v165_v39, %v164_v38 }
  0x62   :  { %812 = vmatprep.subr.bf16.mxu0 %v1080_v0  ;;  %v135_v45 = vld [vmem:[#allocation7 + $0x1b8] sm:$0xff]  ;;  %v75_v46 = vld [vmem:[#allocation2 + $0x18] sm:$0xff]  ;;  %v148_v48 = vld [vmem:[#allocation7 + $0x220] sm:$0xff]  ;;  %v860_v50 = vpack.c.bf16 %v117_v42, %v116_v41 }
  0x63   :  { %841 = vmatpush3.bf16.msra.mxu1 %v840_v60  ;;  %v149_v49 = vld [vmem:[#allocation7 + $0x228] sm:$0xff]  ;;  %v166_v51 = vld [vmem:[#allocation7 + $0x2b0] sm:$0xff]  ;;  %v167_v52 = vld [vmem:[#allocation7 + $0x2b8] sm:$0xff]  ;;  %v862_v54 = vpack.c.bf16 %v135_v45, %v134_v44 }
  0x64   :  { %843 = vmatprep.subr.bf16.mxu1 %v842_v61  ;;  %v77_v53 = vld [vmem:[#allocation2 + $0x28] sm:$0xff]  ;;  %v118_v55 = vld [vmem:[#allocation7 + $0x130] sm:$0xff]  ;;  %v119_v56 = vld [vmem:[#allocation7 + $0x138] sm:$0xff]  ;;  %v892_v57 = vpack.c.bf16 %v149_v49, %v148_v48  ;;  %v894_v60 = vpack.c.bf16 %v167_v52, %v166_v51 }
  0x65   :  { %814 = vmatpush3.bf16.msra.mxu0 %v813_v1  ;;  %v136_v58 = vld [vmem:[#allocation7 + $0x1c0] sm:$0xff]  ;;  %v137_v59 = vld [vmem:[#allocation7 + $0x1c8] sm:$0xff]  ;;  %v150_v61 = vld [vmem:[#allocation7 + $0x230] sm:$0xff]  ;;  %v864_v63 = vpack.c.bf16 %v119_v56, %v118_v55 }
  0x66   :  { %815 = vmatprep.subr.bf16.mxu0 %v1080_v0  ;;  %v115_v0 = vld [vmem:[#allocation7 + $0x118] sm:$0xff]  ;;  %v168_v1 = vld [vmem:[#allocation7 + $0x2c0] sm:$0xff]  ;;  %v169_v2 = vld [vmem:[#allocation7 + $0x2c8] sm:$0xff]  ;;  %v866_v3 = vpack.c.bf16 %v137_v59, %v136_v58 }
  0x67   :  { %845 = vmatpush3.bf16.msra.mxu1 %v844_v6  ;;  %v856_v37 = vpack.c.bf16 %v115_v0, %v114_v29  ;;  %v151_v62 = vld [vmem:[#allocation7 + $0x238] sm:$0xff]  ;;  %v120_v4 = vld [vmem:[#allocation7 + $0x140] sm:$0xff]  ;;  %v121_v5 = vld [vmem:[#allocation7 + $0x148] sm:$0xff] }
  0x68   :  { %847 = vmatprep.subr.bf16.mxu1 %v846_v9  ;;  %v896_v6 = vpack.c.bf16 %v151_v62, %v150_v61  ;;  %v138_v7 = vld [vmem:[#allocation7 + $0x1d0] sm:$0xff]  ;;  %v139_v8 = vld [vmem:[#allocation7 + $0x1d8] sm:$0xff]  ;;  %v898_v9 = vpack.c.bf16 %v169_v2, %v168_v1  ;;  %v152_v10 = vld [vmem:[#allocation7 + $0x240] sm:$0xff] }
  0x69   :  { %817 = vmatpush3.bf16.msra.mxu0 %v816_v12  ;;  %v153_v11 = vld [vmem:[#allocation7 + $0x248] sm:$0xff]  ;;  %v868_v12 = vpack.c.bf16 %v121_v5, %v120_v4  ;;  %v170_v13 = vld [vmem:[#allocation7 + $0x2d0] sm:$0xff]  ;;  %v171_v14 = vld [vmem:[#allocation7 + $0x2d8] sm:$0xff] }
  0x6a   :  { %851 = vmatprep.subr.bf16.mxu0 %v850_v15  ;;  %v870_v15 = vpack.c.bf16 %v139_v8, %v138_v7  ;;  %v122_v16 = vld [vmem:[#allocation7 + $0x150] sm:$0xff]  ;;  %v123_v17 = vld [vmem:[#allocation7 + $0x158] sm:$0xff]  ;;  %v140_v19 = vld [vmem:[#allocation7 + $0x1e0] sm:$0xff] }
  0x6b   :  { %849 = vmatpush3.bf16.msra.mxu1 %v848_v18  ;;  %v900_v18 = vpack.c.bf16 %v153_v11, %v152_v10  ;;  %v141_v20 = vld [vmem:[#allocation7 + $0x1e8] sm:$0xff]  ;;  %v154_v22 = vld [vmem:[#allocation7 + $0x250] sm:$0xff]  ;;  %v155_v23 = vld [vmem:[#allocation7 + $0x258] sm:$0xff] }
  0x6c   :  { %792 = vmatmul.mubr.f32.vlgmr.msra.gmra.mrb[0].mxu0 %v208_v24  ;;  %883 = vmatprep.subr.bf16.mxu1 %v882_v21  ;;  %v902_v21 = vpack.c.bf16 %v171_v14, %v170_v13  ;;  %v872_v24 = vpack.c.bf16 %v123_v17, %v122_v16  ;;  %v173_v26 = vld [vmem:[#allocation7 + $0x2e8] sm:$0xff]  ;;  %v874_v27 = vpack.c.bf16 %v141_v20, %v140_v19  ;;  %v156_v33 = vld [vmem:[#allocation7 + $0x260] sm:$0xff]  ;;  %v174_v36 = vld [vmem:[#allocation7 + $0x2f0] sm:$0xff] }
  0x6d   :  { %853 = vmatpush3.bf16.msra.mxu0 %v852_v25  ;;  %429 = vmatprep.mubr.f32.mxu0 %v75_v46  ;;  %v172_v25 = vld [vmem:[#allocation7 + $0x2e0] sm:$0xff]  ;;  %v125_v29 = vld [vmem:[#allocation7 + $0x168] sm:$0xff]  ;;  %v904_v0 = vpack.c.bf16 %v155_v23, %v154_v22  ;;  %v126_v39 = vld [vmem:[#allocation7 + $0x170] sm:$0xff] }
  0x6e   :  { %360 = vmatmul.mubr.f32.vlgmr.msra.gmra.mrb[0].mxu1 %v72_v30  ;;  %855 = vmatprep.subr.bf16.mxu0 %v854_v28  ;;  %v124_v28 = vld [vmem:[#allocation7 + $0x160] sm:$0xff]  ;;  %v142_v30 = vld [vmem:[#allocation7 + $0x1f0] sm:$0xff]  ;;  %v906_v32 = vpack.c.bf16 %v173_v26, %v172_v25  ;;  %v159_v46 = vld [vmem:[#allocation7 + $0x278] sm:$0xff] }
  0x6f   :  { %885 = vmatpush3.bf16.msra.mxu1 %v884_v31  ;;  %499 = vmatprep.mubr.f32.mxu1 %v77_v53  ;;  %v143_v31 = vld [vmem:[#allocation7 + $0x1f8] sm:$0xff]  ;;  %v876_v35 = vpack.c.bf16 %v125_v29, %v124_v28  ;;  %v192_v42 = vld [vmem:[#allocation7 + $0x380] sm:$0xff]  ;;  %v158_v45 = vld [vmem:[#allocation7 + $0x270] sm:$0xff] }
  0x70   :  { %887 = vmatprep.subr.bf16.mxu1 %v886_v34  ;;  %v157_v34 = vld [vmem:[#allocation7 + $0x268] sm:$0xff]  ;;  %v878_v38 = vpack.c.bf16 %v143_v31, %v142_v30  ;;  %v176_v49 = vld [vmem:[#allocation7 + $0x300] sm:$0xff]  ;;  %v912_v51 = vpack.c.bf16 %v159_v46, %v158_v45  ;;  %v194_v52 = vld [vmem:[#allocation7 + $0x390] sm:$0xff] }
  0x71   :  { %857 = vmatpush3.bf16.msra.mxu0 %v856_v37  ;;  %v175_v37 = vld [vmem:[#allocation7 + $0x2f8] sm:$0xff]  ;;  %v908_v41 = vpack.c.bf16 %v157_v34, %v156_v33  ;;  %v79_v59 = vld [vmem:[#allocation2 + $0x38] sm:$0xff]  ;;  %v196_v61 = vld [vmem:[#allocation7 + $0x3a0] sm:$0xff] }
  0x72   :  { %859 = vmatprep.subr.bf16.mxu0 %v858_v40  ;;  %v127_v40 = vld [vmem:[#allocation7 + $0x178] sm:$0xff]  ;;  %v910_v44 = vpack.c.bf16 %v175_v37, %v174_v36  ;;  %v197_v62 = vld [vmem:[#allocation7 + $0x3a8] sm:$0xff]  ;;  %v180_v2 = vld [vmem:[#allocation7 + $0x320] sm:$0xff] }
  0x73   :  { %889 = vmatpush3.bf16.msra.mxu1 %v888_v43  ;;  %v193_v43 = vld [vmem:[#allocation7 + $0x388] sm:$0xff]  ;;  %v195_v53 = vld [vmem:[#allocation7 + $0x398] sm:$0xff]  ;;  %v922_v1 = vpack.c.bf16 %v197_v62, %v196_v61  ;;  %v198_v4 = vld [vmem:[#allocation7 + $0x3b0] sm:$0xff] }
  0x74   :  { %891 = vmatprep.subr.bf16.mxu1 %v890_v47  ;;  %v880_v47 = vpack.c.bf16 %v127_v40, %v126_v39  ;;  %v914_v48 = vpack.c.bf16 %v193_v43, %v192_v42  ;;  %v918_v56 = vpack.c.bf16 %v195_v53, %v194_v52  ;;  %v179_v58 = vld [vmem:[#allocation7 + $0x318] sm:$0xff]  ;;  %v182_v8 = vld [vmem:[#allocation7 + $0x330] sm:$0xff]  ;;  %v200_v10 = vld [vmem:[#allocation7 + $0x3c0] sm:$0xff] }
  0x75   :  { %861 = vmatpush3.bf16.msra.mxu0 %v860_v50  ;;  %v177_v50 = vld [vmem:[#allocation7 + $0x308] sm:$0xff]  ;;  %v199_v5 = vld [vmem:[#allocation7 + $0x3b8] sm:$0xff]  ;;  %v184_v14 = vld [vmem:[#allocation7 + $0x340] sm:$0xff] }
  0x76   :  { %863 = vmatprep.subr.bf16.mxu0 %v862_v54  ;;  %v74_v54 = vld [vmem:[#allocation2 + $0x10] sm:$0xff]  ;;  %v916_v55 = vpack.c.bf16 %v177_v50, %v176_v49  ;;  %v926_v7 = vpack.c.bf16 %v199_v5, %v198_v4  ;;  %v202_v16 = vld [vmem:[#allocation7 + $0x3d0] sm:$0xff]  ;;  %v203_v17 = vld [vmem:[#allocation7 + $0x3d8] sm:$0xff] }
  0x77   :  { %893 = vmatpush3.bf16.msra.mxu1 %v892_v57  ;;  %v178_v57 = vld [vmem:[#allocation7 + $0x310] sm:$0xff]  ;;  %v201_v11 = vld [vmem:[#allocation7 + $0x3c8] sm:$0xff]  ;;  %v934_v19 = vpack.c.bf16 %v203_v17, %v202_v16  ;;  %v204_v22 = vld [vmem:[#allocation7 + $0x3e0] sm:$0xff] }
  0x78   :  { %895 = vmatprep.subr.bf16.mxu1 %v894_v60  ;;  %v76_v60 = vld [vmem:[#allocation2 + $0x20] sm:$0xff]  ;;  %v930_v13 = vpack.c.bf16 %v201_v11, %v200_v10  ;;  %v186_v20 = vld [vmem:[#allocation7 + $0x350] sm:$0xff]  ;;  %v205_v23 = vld [vmem:[#allocation7 + $0x3e8] sm:$0xff] }
  0x79   :  { %865 = vmatpush3.bf16.msra.mxu0 %v864_v63  ;;  %v920_v63 = vpack.c.bf16 %v179_v58, %v178_v57  ;;  %v938_v25 = vpack.c.bf16 %v205_v23, %v204_v22  ;;  %v188_v26 = vld [vmem:[#allocation7 + $0x360] sm:$0xff]  ;;  %v206_v28 = vld [vmem:[#allocation7 + $0x3f0] sm:$0xff]  ;;  %v207_v29 = vld [vmem:[#allocation7 + $0x3f8] sm:$0xff] }
  0x7a   :  { %867 = vmatprep.subr.bf16.mxu0 %v866_v3  ;;  %v181_v3 = vld [vmem:[#allocation7 + $0x328] sm:$0xff]  ;;  %v942_v30 = vpack.c.bf16 %v207_v29, %v206_v28  ;;  %v190_v31 = vld [vmem:[#allocation7 + $0x370] sm:$0xff]  ;;  %v601_v52 = vld [vmem:[%s1189_s4] ss:$0 sm:$0xff] }
  0x7b   :  { %897 = vmatpush3.bf16.msra.mxu1 %v896_v6  ;;  %v924_v6 = vpack.c.bf16 %v181_v3, %v180_v2  ;;  %v78_v34 = vld [vmem:[#allocation2 + $0x30] sm:$0xff] }
  0x7c   :  { %899 = vmatprep.subr.bf16.mxu1 %v898_v9  ;;  %v183_v9 = vld [vmem:[#allocation7 + $0x338] sm:$0xff] }
  0x7d   :  { %869 = vmatpush3.bf16.msra.mxu0 %v868_v12  ;;  %v928_v12 = vpack.c.bf16 %v183_v9, %v182_v8 }
  0x7e   :  { %871 = vmatprep.subr.bf16.mxu0 %v870_v15  ;;  %v185_v15 = vld [vmem:[#allocation7 + $0x348] sm:$0xff] }
  0x7f   :  { %901 = vmatpush3.bf16.msra.mxu1 %v900_v18  ;;  %v932_v18 = vpack.c.bf16 %v185_v15, %v184_v14 }
  0x80   :  { %903 = vmatprep.subr.bf16.mxu1 %v902_v21  ;;  %v187_v21 = vld [vmem:[#allocation7 + $0x358] sm:$0xff] }
  0x81   :  { %873 = vmatpush3.bf16.msra.mxu0 %v872_v24  ;;  %v936_v24 = vpack.c.bf16 %v187_v21, %v186_v20 }
  0x82   :  { %875 = vmatprep.subr.bf16.mxu0 %v874_v27  ;;  %v189_v27 = vld [vmem:[#allocation7 + $0x368] sm:$0xff] }
  0x83   :  { %905 = vmatpush3.bf16.msra.mxu1 %v904_v0  ;;  %v940_v0 = vpack.c.bf16 %v189_v27, %v188_v26 }
  0x84   :  { %907 = vmatprep.subr.bf16.mxu1 %v906_v32  ;;  %v191_v32 = vld [vmem:[#allocation7 + $0x378] sm:$0xff] }
  0x85   :  { %877 = vmatpush3.bf16.msra.mxu0 %v876_v35  ;;  %v944_v33 = vpack.c.bf16 %v191_v32, %v190_v31 }
  0x86   :  { %879 = vmatprep.subr.bf16.mxu0 %v878_v38 }
  0x87   :  { %909 = vmatpush3.bf16.msra.mxu1 %v908_v41 }
  0x88   :  { %911 = vmatprep.subr.bf16.mxu1 %v910_v44 }
  0x89   :  { %881 = vmatpush3.bf16.msra.mxu0 %v880_v47 }
  0x8a   :  { %915 = vmatprep.subr.bf16.mxu0 %v914_v48 }
  0x8b   :  { %913 = vmatpush3.bf16.msra.mxu1 %v912_v51 }
  0x8c   :  { %430 = vmatmul.mubr.f32.vlgmr.msra.gmra.mrb[2].mxu0 %v74_v54 }
  0x8d   :  { %917 = vmatpush3.bf16.msra.mxu0 %v916_v55  ;;  %569 = vmatprep.mubr.f32.mxu0 %v79_v59 }
  0x8e   :  { %500 = vmatmul.mubr.f32.vlgmr.msra.gmra.mrb[2].mxu1 %v76_v60  ;;  %919 = vmatprep.subr.bf16.mxu0 %v918_v56 }
  0x91   :  { %921 = vmatpush3.bf16.msra.mxu0 %v920_v63 }
  0x92   :  { %923 = vmatprep.subr.bf16.mxu0 %v922_v1 }
  0x95   :  { %925 = vmatpush3.bf16.msra.mxu0 %v924_v6 }
  0x96   :  { %927 = vmatprep.subr.bf16.mxu0 %v926_v7 }
  0x99   :  { %929 = vmatpush3.bf16.msra.mxu0 %v928_v12 }
  0x9a   :  { %931 = vmatprep.subr.bf16.mxu0 %v930_v13 }
  0x9d   :  { %933 = vmatpush3.bf16.msra.mxu0 %v932_v18 }
  0x9e   :  { %935 = vmatprep.subr.bf16.mxu0 %v934_v19 }
  0xa1   :  { %937 = vmatpush3.bf16.msra.mxu0 %v936_v24 }
  0xa2   :  { %939 = vmatprep.subr.bf16.mxu0 %v938_v25 }
  0xa5   :  { %941 = vmatpush3.bf16.msra.mxu0 %v940_v0 }
  0xa6   :  { %943 = vmatprep.subr.bf16.mxu0 %v942_v30 }
  0xa9   :  { %945 = vmatpush3.bf16.msra.mxu0 %v944_v33 }
  0xac   :  { %570 = vmatmul.mubr.f32.vlgmr.msra.gmra.mrb[4].mxu0 %v78_v34 }
 0x13f   :  { %v291_v35 = vpop.f32.mrb[0].mxu0 }
 0x140   :  { %v793_v36 = vpop.f32.mrb[1].mxu0 }
 0x141   :  { %v651_v37 = vpop.f32.mrb[0].mxu1 }
 0x142   :  { %v652_v38 = vpop.f32.mrb[1].mxu1 }
 0x143   :  { %v653_v39 = vadd.f32 %v652_v38, %v651_v37 }
 0x145   :  { %v362_v40 = vadd.f32 %v653_v39, %v291_v35 }
 0x15f   :  { %v686_v41 = vpop.f32.mrb[2].mxu0 }
 0x160   :  { %v687_v42 = vpop.f32.mrb[3].mxu0 }
 0x161   :  { %v688_v43 = vadd.f32 %v687_v42, %v686_v41  ;;  %v721_v44 = vpop.f32.mrb[2].mxu1 }
 0x162   :  { %v722_v45 = vpop.f32.mrb[3].mxu1 }
 0x163   :  { %v432_v46 = vadd.f32 %v688_v43, %v362_v40  ;;  %v723_v47 = vadd.f32 %v722_v45, %v721_v44 }
 0x165   :  { %v502_v48 = vadd.f32 %v723_v47, %v432_v46 }
 0x17f   :  { %v756_v49 = vpop.f32.mrb[4].mxu0 }
 0x180   :  { %v757_v50 = vpop.f32.mrb[5].mxu0 }
 0x181   :  { %v758_v51 = vadd.f32 %v757_v50, %v756_v49 }
 0x183   :  { %v572_v53 = vadd.f32 %v758_v51, %v502_v48 }
 0x185   :  { %v582_v54 = vadd.f32 %v601_v52, %v572_v53 }
 0x187   :  { %583 = vst [vmem:[#allocation10] sm:$0xff] %v582_v54 }
 0x188   :  { %1055 = shalt.err (!%p1052_p8)
}
 0x189   :  { %s1056_s20 = scalar_lea.hbm %s1190_s5, 128 }
 0x18a   :  { %p1057_p9 = scmp.ne.s32.totalorder %s1190_s5, %s1056_s20  ;;  %p1060_p10 = scmp.lt.u32.totalorder %s1056_s20, %s1190_s5 }
 0x18c   :  { %p1062_p11 = pnand %p1060_p10, %p1057_p9 }
 0x18e   :  { %1065 = shalt.err (!%p1062_p11)
}
 0x18f   :  { %593 = dma.vmem_to_hbm [thread:$0]  %s591_s16, 128, %s1190_s5, [#allocation4]  }
 0x190   :  { %1072 = dma.done.wait [#allocation4], 128  }
 0x191   :  { %1073 = vsyncadd [#allocation4], 4294967168 }
 0x192   :  { %597 = vsyncpa [#allocation3], 1 }
 0x193   :  { %598 = vsyncpa [#allocation6], 1 }
 0x194   :  { %599 = vsyncpa [#allocation9], 1 }
 0x195   :  { %600 = vsyncpa [#allocation4], 1 }

</bundles_post_ra>
